<compile_context>
chip_gen: v6e
topology: v6e:2x2x1
jax: 0.10.0
libtpu: 0.0.40
codegen_flags: <defaults>
</compile_context>

<pallas_src>
import jax
import jax.numpy as jnp
from jax.experimental import pallas as pl
from jax.experimental.pallas import tpu as pltpu

_TB_MAX = 4096          # batch rows per grid step (f32 inputs: ~0.5 MiB/step)
_HIDDEN_PAD = 128       # hidden dim padded 100 -> 128 (lane-aligned)


def _gail_disc_kernel(s_ref, a_ref, w1s_ref, w1a_ref, b1_ref,
                      w2_ref, b2_ref, w3_ref, b3_ref, o_ref):
    """One batch tile of the fused 3-layer MLP; weights are VMEM-resident."""
    s = s_ref[...].astype(jnp.bfloat16)
    a = a_ref[...].astype(jnp.bfloat16)

    # Layer 1: split matmul replaces the concat([states, actions]) @ W1.
    pre1 = jnp.dot(s, w1s_ref[...], preferred_element_type=jnp.float32)
    pre1 = pre1 + jnp.dot(a, w1a_ref[...], preferred_element_type=jnp.float32)
    h1 = jnp.tanh(pre1 + b1_ref[...])            # f32 tanh (v5e-safe EUP path)

    # Layer 2.
    pre2 = jnp.dot(h1.astype(jnp.bfloat16), w2_ref[...],
                   preferred_element_type=jnp.float32)
    h2 = jnp.tanh(pre2 + b2_ref[...])

    # Output layer (N=1); scalar bias comes from SMEM.
    logits = jnp.dot(h2.astype(jnp.bfloat16), w3_ref[...],
                     preferred_element_type=jnp.float32) + b3_ref[0, 0]
    o_ref[...] = logits.astype(o_ref.dtype)


@jax.jit
def gail_discrim_forward(states, actions, params):
    """states: (B, S) f32, actions: (B, A) f32 -> logits (B, 1) f32."""
    w1s, w1a, b1, w2, b2, w3, b3 = params
    B, S = states.shape
    A = actions.shape[1]
    H = w1s.shape[1]

    # Pad batch to a multiple of 8 (sublane alignment); sliced off afterwards.
    B_pad = -(-B // 8) * 8
    if B_pad != B:
        pad = B_pad - B
        states = jnp.pad(states, ((0, pad), (0, 0)))
        actions = jnp.pad(actions, ((0, pad), (0, 0)))

    TB = min(_TB_MAX, B_pad)
    grid = (pl.cdiv(B_pad, TB),)

    weight_bytes = (w1s.size + w1a.size + w2.size + w3.size) * 2 \
                   + (b1.size + b2.size + b3.size) * 4
    cost = pl.CostEstimate(
        flops=2 * B_pad * ((S + A) * H + H * H + H),
        transcendentals=2 * B_pad * H,
        bytes_accessed=B_pad * (S + A) * 4 + B_pad * 4 + weight_bytes,
    )

    def row_spec(cols):
        return pl.BlockSpec((TB, cols), lambda i: (i, 0))

    def const_spec(shape):
        # Constant block index -> DMA'd once, stays VMEM-resident over the grid.
        return pl.BlockSpec(shape, lambda i: (0, 0))

    out = pl.pallas_call(
        _gail_disc_kernel,
        out_shape=jax.ShapeDtypeStruct((B_pad, 1), jnp.float32),
        grid=grid,
        in_specs=[
            row_spec(S),                 # states tile (streamed)
            row_spec(A),                 # actions tile (streamed)
            const_spec(w1s.shape),       # W1 (state part), resident
            const_spec(w1a.shape),       # W1 (action part), resident
            const_spec(b1.shape),
            const_spec(w2.shape),
            const_spec(b2.shape),
            const_spec(w3.shape),
            pl.BlockSpec(memory_space=pltpu.MemorySpace.SMEM),  # b3 scalar
        ],
        out_specs=row_spec(1),
        compiler_params=pltpu.CompilerParams(
            dimension_semantics=("parallel",)),   # megacore split on v7x
        cost_estimate=cost,
    )(states, actions, w1s, w1a, b1, w2, b2, w3, b3)

    return out[:B]


def gail_calculate_reward(states, actions, params):
    """GAIL reward -logsigmoid(-logits) == softplus(logits)."""
    return jax.nn.softplus(gail_discrim_forward(states, actions, params))


def init_params(key, state_size, action_size, hidden_units=(100, 100)):
    """PyTorch nn.Linear-style init; weights stored as (in, out).

    Hidden layers are zero-padded to _HIDDEN_PAD lanes (numerically a no-op).
    W1 is split into state / action halves; matmul weights stored in bf16,
    biases in f32. Requires hidden_units[i] <= _HIDDEN_PAD.
    """
    h1_dim, h2_dim = hidden_units
    assert h1_dim <= _HIDDEN_PAD and h2_dim <= _HIDDEN_PAD
    H = _HIDDEN_PAD
    dims = [state_size + action_size, h1_dim, h2_dim, 1]
    raw_w, raw_b = [], []
    for i in range(len(dims) - 1):
        fan_in, fan_out = dims[i], dims[i + 1]
        key, kw, kb = jax.random.split(key, 3)
        bound = float(fan_in) ** -0.5
        raw_w.append(jax.random.uniform(kw, (fan_in, fan_out), jnp.float32,
                                        minval=-bound, maxval=bound))
        raw_b.append(jax.random.uniform(kb, (1, fan_out), jnp.float32,
                                        minval=-bound, maxval=bound))

    w1 = jnp.zeros((dims[0], H), jnp.float32).at[:, :h1_dim].set(raw_w[0])
    b1 = jnp.zeros((1, H), jnp.float32).at[:, :h1_dim].set(raw_b[0])
    w2 = jnp.zeros((H, H), jnp.float32).at[:h1_dim, :h2_dim].set(raw_w[1])
    b2 = jnp.zeros((1, H), jnp.float32).at[:, :h2_dim].set(raw_b[1])
    w3 = jnp.zeros((H, 1), jnp.float32).at[:h2_dim, :].set(raw_w[2])
    b3 = raw_b[2]                                            # (1, 1)

    w1s = w1[:state_size].astype(jnp.bfloat16)
    w1a = w1[state_size:].astype(jnp.bfloat16)
    return (w1s, w1a, b1, w2.astype(jnp.bfloat16), b2,
            w3.astype(jnp.bfloat16), b3)


def _reference_forward(states, actions, params):
    """Pure-JAX reference mirroring the kernel's bf16-matmul / f32-accum math."""
    w1s, w1a, b1, w2, b2, w3, b3 = params
    bf = jnp.bfloat16
    pre1 = (jnp.dot(states.astype(bf), w1s, preferred_element_type=jnp.float32)
            + jnp.dot(actions.astype(bf), w1a, preferred_element_type=jnp.float32))
    h1 = jnp.tanh(pre1 + b1)
    h2 = jnp.tanh(jnp.dot(h1.astype(bf), w2,
                          preferred_element_type=jnp.float32) + b2)
    return jnp.dot(h2.astype(bf), w3,
                   preferred_element_type=jnp.float32) + b3


if __name__ == "__main__":
    key = jax.random.PRNGKey(0)
    k_params, k_s, k_a = jax.random.split(key, 3)

    batch = 8
    state_size = 24
    action_size = 8

    params = init_params(k_params, state_size, action_size)
    states = jax.random.normal(k_s, (batch, state_size), jnp.float32)
    actions = jax.random.normal(k_a, (batch, action_size), jnp.float32)

    logits = gail_discrim_forward(states, actions, params)
    jax.block_until_ready(logits)

    ref = _reference_forward(states, actions, params)
    assert logits.shape == (batch, 1)
    assert jnp.allclose(logits, ref, atol=1e-3, rtol=1e-3), (
        "Pallas kernel output mismatch vs reference")

    # GAIL reward signal -logsigmoid(-logits): elementwise post-processing of
    # the forward pass, done in plain JAX on top of the kernel output.
    reward = gail_calculate_reward(states, actions, params)
    jax.block_until_ready(reward)
    assert jnp.allclose(reward, jax.nn.softplus(ref), atol=1e-3, rtol=1e-3)

    print("KERNEL_OK")
</pallas_src>

<mosaic_0001>
module attributes {stable_mosaic.version = 11 : i64} {
  func.func @_gail_disc_kernel(%arg0: i32, %arg1: memref<8x24xf32, #tpu.memory_space<vmem>>, %arg2: memref<8x8xf32, #tpu.memory_space<vmem>>, %arg3: memref<24x128xbf16, #tpu.memory_space<vmem>>, %arg4: memref<8x128xbf16, #tpu.memory_space<vmem>>, %arg5: memref<1x128xf32, #tpu.memory_space<vmem>>, %arg6: memref<128x128xbf16, #tpu.memory_space<vmem>>, %arg7: memref<1x128xf32, #tpu.memory_space<vmem>>, %arg8: memref<128x1xbf16, #tpu.memory_space<vmem>>, %arg9: memref<1x1xf32, #tpu.memory_space<smem>>, %arg10: memref<8x1xf32, #tpu.memory_space<vmem>>) attributes {dimension_semantics = [#tpu.dimension_semantics<parallel>], iteration_bounds = array<i64: 1>, scalar_prefetch = 0 : i64, scratch_operands = 0 : i64, tpu.core_type = #tpu.core_type<tc>, window_params = [{transform_indices = @transform_0, window_bounds = array<i64: 8, 24>}, {transform_indices = @transform_1, window_bounds = array<i64: 8, 8>}, {pipeline_mode = #tpu.pipeline_mode<synchronous>, transform_indices = @transform_2, window_bounds = array<i64: 24, 128>}, {pipeline_mode = #tpu.pipeline_mode<synchronous>, transform_indices = @transform_3, window_bounds = array<i64: 8, 128>}, {pipeline_mode = #tpu.pipeline_mode<synchronous>, transform_indices = @transform_4, window_bounds = array<i64: 1, 128>}, {pipeline_mode = #tpu.pipeline_mode<synchronous>, transform_indices = @transform_5, window_bounds = array<i64: 128, 128>}, {pipeline_mode = #tpu.pipeline_mode<synchronous>, transform_indices = @transform_6, window_bounds = array<i64: 1, 128>}, {pipeline_mode = #tpu.pipeline_mode<synchronous>, transform_indices = @transform_7, window_bounds = array<i64: 128, 1>}, {transform_indices = @transform_8, window_bounds = array<i64: 1, 1>}, {transform_indices = @transform_9, window_bounds = array<i64: 8, 1>}]} {
    %c0 = arith.constant 0 : index
    %c0_0 = arith.constant 0 : index
    %0 = vector.load %arg1[%c0, %c0_0] : memref<8x24xf32, #tpu.memory_space<vmem>>, vector<8x24xf32>
    %1 = arith.truncf %0 : vector<8x24xf32> to vector<8x24xbf16>
    %c0_1 = arith.constant 0 : index
    %c0_2 = arith.constant 0 : index
    %2 = vector.load %arg2[%c0_1, %c0_2] : memref<8x8xf32, #tpu.memory_space<vmem>>, vector<8x8xf32>
    %3 = arith.truncf %2 : vector<8x8xf32> to vector<8x8xbf16>
    %c0_3 = arith.constant 0 : index
    %c0_4 = arith.constant 0 : index
    %4 = vector.load %arg3[%c0_3, %c0_4] : memref<24x128xbf16, #tpu.memory_space<vmem>>, vector<24x128xbf16>
    %cst = arith.constant dense<0.000000e+00> : vector<8x128xf32>
    %5 = tpu.matmul %1, %4, %cst {dimension_numbers = #tpu.dot_dimension_numbers<[1], [0], [0], [1], [0, 0, 1, 1], [], []>} : vector<8x24xbf16>, vector<24x128xbf16>, vector<8x128xf32> -> vector<8x128xf32>
    %c0_5 = arith.constant 0 : index
    %c0_6 = arith.constant 0 : index
    %6 = vector.load %arg4[%c0_5, %c0_6] : memref<8x128xbf16, #tpu.memory_space<vmem>>, vector<8x128xbf16>
    %cst_7 = arith.constant dense<0.000000e+00> : vector<8x128xf32>
    %7 = tpu.matmul %3, %6, %cst_7 {dimension_numbers = #tpu.dot_dimension_numbers<[1], [0], [0], [1], [0, 0, 1, 1], [], []>} : vector<8x8xbf16>, vector<8x128xbf16>, vector<8x128xf32> -> vector<8x128xf32>
    %8 = arith.addf %5, %7 : vector<8x128xf32>
    %c0_8 = arith.constant 0 : index
    %c0_9 = arith.constant 0 : index
    %9 = vector.load %arg5[%c0_8, %c0_9] : memref<1x128xf32, #tpu.memory_space<vmem>>, vector<1x128xf32>
    %10 = vector.broadcast %9 : vector<1x128xf32> to vector<8x128xf32>
    %11 = arith.addf %8, %10 : vector<8x128xf32>
    %12 = math.tanh %11 : vector<8x128xf32>
    %13 = arith.truncf %12 : vector<8x128xf32> to vector<8x128xbf16>
    %c0_10 = arith.constant 0 : index
    %c0_11 = arith.constant 0 : index
    %14 = vector.load %arg6[%c0_10, %c0_11] : memref<128x128xbf16, #tpu.memory_space<vmem>>, vector<128x128xbf16>
    %cst_12 = arith.constant dense<0.000000e+00> : vector<8x128xf32>
    %15 = tpu.matmul %13, %14, %cst_12 {dimension_numbers = #tpu.dot_dimension_numbers<[1], [0], [0], [1], [0, 0, 1, 1], [], []>} : vector<8x128xbf16>, vector<128x128xbf16>, vector<8x128xf32> -> vector<8x128xf32>
    %c0_13 = arith.constant 0 : index
    %c0_14 = arith.constant 0 : index
    %16 = vector.load %arg7[%c0_13, %c0_14] : memref<1x128xf32, #tpu.memory_space<vmem>>, vector<1x128xf32>
    %17 = vector.broadcast %16 : vector<1x128xf32> to vector<8x128xf32>
    %18 = arith.addf %15, %17 : vector<8x128xf32>
    %19 = math.tanh %18 : vector<8x128xf32>
    %20 = arith.truncf %19 : vector<8x128xf32> to vector<8x128xbf16>
    %c0_15 = arith.constant 0 : index
    %c0_16 = arith.constant 0 : index
    %21 = vector.load %arg8[%c0_15, %c0_16] : memref<128x1xbf16, #tpu.memory_space<vmem>>, vector<128x1xbf16>
    %cst_17 = arith.constant dense<0.000000e+00> : vector<8x1xf32>
    %22 = tpu.matmul %20, %21, %cst_17 {dimension_numbers = #tpu.dot_dimension_numbers<[1], [0], [0], [1], [0, 0, 1, 1], [], []>} : vector<8x128xbf16>, vector<128x1xbf16>, vector<8x1xf32> -> vector<8x1xf32>
    %c0_18 = arith.constant 0 : index
    %c0_19 = arith.constant 0 : index
    %23 = memref.load %arg9[%c0_18, %c0_19] : memref<1x1xf32, #tpu.memory_space<smem>>
    %24 = vector.broadcast %23 : f32 to vector<8x1xf32>
    %25 = arith.addf %22, %24 : vector<8x1xf32>
    %c0_20 = arith.constant 0 : index
    %c0_21 = arith.constant 0 : index
    %26 = vector.load %arg10[%c0_20, %c0_21] : memref<8x1xf32, #tpu.memory_space<vmem>>, vector<8x1xf32>
    tpu.vector_store %arg10[%c0_20, %c0_21], %25 {strides = array<i32>} : memref<8x1xf32, #tpu.memory_space<vmem>>, vector<8x1xf32>,
    return
  }
  func.func @transform_0(%arg0: i32) -> (i32, i32) {
    %c0_i32 = arith.constant 0 : i32
    %c0_i32_0 = arith.constant 0 : i32
    return %arg0, %c0_i32 : i32, i32
  }
  func.func @transform_1(%arg0: i32) -> (i32, i32) {
    %c0_i32 = arith.constant 0 : i32
    %c0_i32_0 = arith.constant 0 : i32
    return %arg0, %c0_i32 : i32, i32
  }
  func.func @transform_2(%arg0: i32) -> (i32, i32) {
    %c0_i32 = arith.constant 0 : i32
    %c0_i32_0 = arith.constant 0 : i32
    %c0_i32_1 = arith.constant 0 : i32
    return %c0_i32, %c0_i32_0 : i32, i32
  }
  func.func @transform_3(%arg0: i32) -> (i32, i32) {
    %c0_i32 = arith.constant 0 : i32
    %c0_i32_0 = arith.constant 0 : i32
    %c0_i32_1 = arith.constant 0 : i32
    return %c0_i32, %c0_i32_0 : i32, i32
  }
  func.func @transform_4(%arg0: i32) -> (i32, i32) {
    %c0_i32 = arith.constant 0 : i32
    %c0_i32_0 = arith.constant 0 : i32
    %c0_i32_1 = arith.constant 0 : i32
    return %c0_i32, %c0_i32_0 : i32, i32
  }
  func.func @transform_5(%arg0: i32) -> (i32, i32) {
    %c0_i32 = arith.constant 0 : i32
    %c0_i32_0 = arith.constant 0 : i32
    %c0_i32_1 = arith.constant 0 : i32
    return %c0_i32, %c0_i32_0 : i32, i32
  }
  func.func @transform_6(%arg0: i32) -> (i32, i32) {
    %c0_i32 = arith.constant 0 : i32
    %c0_i32_0 = arith.constant 0 : i32
    %c0_i32_1 = arith.constant 0 : i32
    return %c0_i32, %c0_i32_0 : i32, i32
  }
  func.func @transform_7(%arg0: i32) -> (i32, i32) {
    %c0_i32 = arith.constant 0 : i32
    %c0_i32_0 = arith.constant 0 : i32
    %c0_i32_1 = arith.constant 0 : i32
    return %c0_i32, %c0_i32_0 : i32, i32
  }
  func.func @transform_8(%arg0: i32) -> (i32, i32) {
    %c0_i32 = arith.constant 0 : i32
    %c0_i32_0 = arith.constant 0 : i32
    %c0_i32_1 = arith.constant 0 : i32
    return %c0_i32, %c0_i32_0 : i32, i32
  }
  func.func @transform_9(%arg0: i32) -> (i32, i32) {
    %c0_i32 = arith.constant 0 : i32
    %c0_i32_0 = arith.constant 0 : i32
    return %arg0, %c0_i32 : i32, i32
  }
}

</mosaic_0001>

<bundles_post_ra>
// kernel: gail_discrim_forward.1
= control target key start
LH: loop header
LB: loop body
LE: loop exit
PB: predicated region body
PF: predicated region fallthrough
CT: control target
= control target key end

     0   :  { %15 = vsyncpa [#allocation4], 0  ;;  %s835_s0 = inlined_call_operand.hbm [shape: f32[8,24], index: 0, kind: input, shape index: {}]   ;;  %s836_s1 = inlined_call_operand.hbm [shape: f32[8,8], index: 1, kind: input, shape index: {}]   ;;  %s837_s2 = inlined_call_operand.vmem [shape: bf16[24,128], index: 2, kind: input, shape index: {}]   ;;  %s838_s3 = inlined_call_operand.hbm [shape: bf16[8,128], index: 3, kind: input, shape index: {}]   ;;  %s839_s4 = inlined_call_operand.hbm [shape: f32[1,128], index: 4, kind: input, shape index: {}]   ;;  %s840_s5 = inlined_call_operand.vmem [shape: bf16[128,128], index: 5, kind: input, shape index: {}]   ;;  %s841_s6 = inlined_call_operand.hbm [shape: f32[1,128], index: 6, kind: input, shape index: {}]   ;;  %s842_s7 = inlined_call_operand.vmem [shape: bf16[128,1], index: 7, kind: input, shape index: {}]   ;;  %s843_s8 = inlined_call_operand.<no memory space> [shape: f32[1,1], index: 8, kind: input, shape index: {}]   ;;  %s844_s9 = inlined_call_operand.vmem [shape: f32[8,1], index: 9, kind: output, shape index: {}]  }
   0x1   :  { %16 = vsyncpa [#allocation6], 0 }
   0x2   :  { %17 = vsyncpa [#allocation9], 0  ;;  %s676_s30 = smov [#allocation5]   ;;  %s677_s11 = smov [#allocation8]  }
   0x3   :  { %s34_s10 = sshll.u32 %s676_s30, 4  ;;  %s56_s12 = sshll.u32 %s677_s11, 4  ;;  %s35_s10 = int_to_ptr.vmem [resolvable:$true] %s34_s10  ;;  %s57_s12 = int_to_ptr.vmem [resolvable:$true] %s56_s12 }
   0x4   :  { %s578_s13 = scalar_lea.vmem %s35_s10, 128  ;;  %p583_p1 = scmp.lt.s32.totalorder %s35_s10, %s35_s10 }
   0x5   :  { %p579_p0 = scmp.ne.s32.totalorder %s35_s10, %s578_s13  ;;  %p584_p2 = scmp.lt.s32.totalorder %s578_s13, %s578_s13 }
   0x7   :  { %p585_p3 = por %p584_p2, %p583_p1 }
   0x9   :  { %p586_p4 = pnand %p585_p3, %p579_p0 }
   0xb   :  { %589 = shalt.err (!%p586_p4)
}
   0xc   :  { %37 = dma.hbm_to_vmem [thread:$0]  %s836_s1, 128, %s35_s10, [#allocation6]  }
   0xd   :  { %s598_s16 = scalar_lea.vmem %s57_s12, 16  ;;  %s602_s17 = scalar_lea.vmem %s57_s12, 32 }
   0xe   :  { %p599_p5 = scmp.ne.s32.totalorder %s57_s12, %s598_s16  ;;  %p603_p6 = scmp.lt.s32.totalorder %s57_s12, %s57_s12 }
   0xf   :  { %p604_p7 = scmp.lt.s32.totalorder %s602_s17, %s598_s16 }
  0x11   :  { %p605_p8 = por %p604_p7, %p603_p6 }
  0x13   :  { %p606_p9 = pnand %p605_p8, %p599_p5 }
  0x15   :  { %609 = shalt.err (!%p606_p9)
}
  0x16   :  { %59 = dma.hbm_to_vmem [thread:$0]  %s839_s4, 16, %s57_s12, [#allocation9]  }
  0x17   :  { %s678_s20 = smov [#allocation3]   ;;  %s679_s22 = smov [#allocation7]  }
  0x18   :  { %s24_s21 = sshll.u32 %s678_s20, 4  ;;  %s46_s23 = sshll.u32 %s679_s22, 4  ;;  %s25_s21 = int_to_ptr.vmem [resolvable:$true] %s24_s21  ;;  %s47_s23 = int_to_ptr.vmem [resolvable:$true] %s46_s23 }
  0x19   :  { %s618_s24 = scalar_lea.vmem %s25_s21, 128  ;;  %p623_p11 = scmp.lt.s32.totalorder %s25_s21, %s25_s21 }
  0x1a   :  { %p619_p10 = scmp.ne.s32.totalorder %s25_s21, %s618_s24  ;;  %p624_p12 = scmp.lt.s32.totalorder %s618_s24, %s618_s24 }
  0x1c   :  { %p625_p13 = por %p624_p12, %p623_p11 }
  0x1e   :  { %p626_p0 = pnand %p625_p13, %p619_p10 }
  0x20   :  { %629 = shalt.err (!%p626_p0)
}
  0x21   :  { %27 = dma.hbm_to_vmem [thread:$0]  %s835_s0, 128, %s25_s21, [#allocation4]  }
  0x22   :  { %s638_s26 = scalar_lea.vmem %s47_s23, 64  ;;  %p643_p2 = scmp.lt.s32.totalorder %s47_s23, %s47_s23 }
  0x23   :  { %p639_p1 = scmp.ne.s32.totalorder %s47_s23, %s638_s26  ;;  %p644_p3 = scmp.lt.s32.totalorder %s638_s26, %s638_s26 }
  0x25   :  { %p645_p4 = por %p644_p3, %p643_p2 }
  0x27   :  { %p646_p5 = pnand %p645_p4, %p639_p1 }
  0x29   :  { %649 = shalt.err (!%p646_p5)
}
  0x2a   :  { %49 = dma.hbm_to_vmem [thread:$0]  %s838_s3, 64, %s47_s23, [#allocation6]  }
  0x2b   :  { %s680_s28 = smov [#allocation10]  }
  0x2c   :  { %s68_s29 = sshll.u32 %s680_s28, 4  ;;  %s69_s29 = int_to_ptr.vmem [resolvable:$true] %s68_s29 }
  0x2d   :  { %s658_s30 = scalar_lea.vmem %s69_s29, 16  ;;  %s662_s10 = scalar_lea.vmem %s69_s29, 32 }
  0x2e   :  { %p659_p6 = scmp.ne.s32.totalorder %s69_s29, %s658_s30  ;;  %p663_p7 = scmp.lt.s32.totalorder %s69_s29, %s69_s29 }
  0x2f   :  { %p664_p8 = scmp.lt.s32.totalorder %s662_s10, %s658_s30 }
  0x31   :  { %p665_p9 = por %p664_p8, %p663_p7 }
  0x33   :  { %p666_p10 = pnand %p665_p9, %p659_p6 }
  0x35   :  { %669 = shalt.err (!%p666_p10)
}
  0x36   :  { %71 = dma.hbm_to_vmem [thread:$0]  %s841_s6, 16, %s69_s29, [#allocation9]  }
  0x37   :  { %670 = dma.done.wait [#allocation4], 128  }
  0x38   :  { %671 = vsyncadd [#allocation4], 4294967168 }
  0x39   :  { %672 = dma.done.wait [#allocation6], 192  }
  0x3a   :  { %673 = vsyncadd [#allocation6], 4294967104 }
  0x3b   :  { %674 = dma.done.wait [#allocation9], 32  }
  0x3c   :  { %675 = vsyncadd [#allocation9], 4294967264  ;;  %v681_v0 = vmov 0.0   ;;  %vm682_vm0 = vmmov 0   ;;  %vm104_vm1 = vcmask 1043456   ;;  %v94_v4 = vld [vmem:[#allocation5] sm:$0xff]  ;;  %v344_v47 = vstv %s843_s8 }
  0x3d   :  { %487 = vmatprep.subr.bf16.mxu0 %v681_v0  ;;  %493 = vmatprep.subr.bf16.mxu1 %v681_v0  ;;  %v99_v1 = vld [vmem:[#allocation7] sm:$0xf]  ;;  %v548_v2 = vld [vmem:[%s837_s2 + $0x8] ss:$0 sps:$4 sm:$0xff]   ;;  %v95_v6 = vpack.c.bf16 %v94_v4, %v94_v4  ;;  %vm100_vm2 = vcmask 64512   ;;  %v549_v7 = vld [vmem:[%s837_s2] sm:$0xff]  }
  0x3e   :  { %489 = vmatprep.mubr.msk.bf16.mxu0 %vm682_vm0, %v681_v0  ;;  %497 = vmatprep.mubr.msk.bf16.mxu1 %vm682_vm0, %v681_v0  ;;  %v106_v3 = vsel %vm104_vm1, %v99_v1, 0  ;;  %v162_v5 = vsel %vm104_vm1, %v548_v2, 0  ;;  %v92_v8 = vld [vmem:[#allocation3] sm:$0xff]  ;;  %vm157_vm3 = vcmask 195584   ;;  %v550_v9 = vld [vmem:[%s840_s5 + $0x38] sm:$0xff]   ;;  %v551_v11 = vld [vmem:[%s840_s5 + $0x30] sm:$0xff]  }
  0x3f   :  { %488 = vmatpush3.bf16.msra.mxu0 %v106_v3  ;;  %494 = vmatpush3.bf16.msra.mxu1 %v162_v5  ;;  %v93_v10 = vpack.c.bf16 %v92_v8, %v92_v8  ;;  %v552_v12 = vld [vmem:[%s840_s5 + $0x28] sm:$0xff]   ;;  %v553_v13 = vld [vmem:[%s840_s5 + $0x20] sm:$0xff]   ;;  %v554_v14 = vld [vmem:[%s840_s5 + $0x18] sm:$0xff]   ;;  %vm433_vm4 = vcmask 7168  }
  0x40   :  { %501 = vmatprep.subr.bf16.mxu0 %v681_v0  ;;  %495 = vmatprep.subr.bf16.mxu1 %v681_v0  ;;  %v555_v15 = vld [vmem:[%s840_s5 + $0x10] sm:$0xff]   ;;  %v556_v16 = vld [vmem:[%s840_s5 + $0x8] sm:$0xff]   ;;  %v557_v17 = vld [vmem:[%s840_s5] sm:$0xff]  }
  0x41   :  { %v558_v18 = vld [vmem:[%s842_s7 + $0x38] sm:$0xff]   ;;  %v559_v19 = vld [vmem:[%s842_s7 + $0x30] sm:$0xff]   ;;  %v560_v20 = vld [vmem:[%s842_s7 + $0x28] sm:$0xff]  }
  0x42   :  { %490 = vmatmul.mubr.msk.bf16.vlgmr.msra.gmra.mxu0 %vm100_vm2, %v95_v6  ;;  %v446_v25 = vld [vmem:[#allocation8] ss:$0 sm:$0xff]  ;;  %v561_v34 = vld [vmem:[%s842_s7 + $0x20] sm:$0xff]   ;;  %v562_v35 = vld [vmem:[%s842_s7 + $0x18] sm:$0xff]  }
  0x43   :  { %502 = vmatpush3.bf16.msra.mxu0 %v550_v9  ;;  %517 = vmatprep.mubr.msk.bf16.mxu0 %vm682_vm0, %v681_v0  ;;  %v563_v36 = vld [vmem:[%s842_s7 + $0x10] sm:$0xff]   ;;  %v564_v37 = vld [vmem:[%s842_s7 + $0x8] sm:$0xff]   ;;  %v565_v38 = vld [vmem:[%s842_s7] sm:$0xff]  }
  0x44   :  { %496 = vmatpush3.bf16.msra.mxu1 %v549_v7  ;;  %503 = vmatprep.subr.bf16.mxu0 %v681_v0  ;;  %v447_v39 = vld [vmem:[#allocation10] ss:$0 sm:$0xff] }
  0x45   :  { %521 = vmatprep.subr.bf16.mxu1 %v681_v0 }
  0x47   :  { %498 = vmatmul.mubr.msk.bf16.vlgmr.msra.gmra.mxu1 %vm157_vm3, %v93_v10  ;;  %504 = vmatpush3.bf16.msra.mxu0 %v551_v11 }
  0x48   :  { %537 = vmatprep.mubr.msk.bf16.mxu1 %vm682_vm0, %v681_v0  ;;  %505 = vmatprep.subr.bf16.mxu0 %v681_v0 }
  0x49   :  { %522 = vmatpush3.bf16.msra.mxu1 %v558_v18 }
  0x4a   :  { %523 = vmatprep.subr.bf16.mxu1 %v681_v0 }
  0x4b   :  { %506 = vmatpush3.bf16.msra.mxu0 %v552_v12 }
  0x4c   :  { %507 = vmatprep.subr.bf16.mxu0 %v681_v0 }
  0x4d   :  { %524 = vmatpush3.bf16.msra.mxu1 %v559_v19 }
  0x4e   :  { %525 = vmatprep.subr.bf16.mxu1 %v681_v0 }
  0x4f   :  { %508 = vmatpush3.bf16.msra.mxu0 %v553_v13 }
  0x50   :  { %509 = vmatprep.subr.bf16.mxu0 %v681_v0 }
  0x51   :  { %526 = vmatpush3.bf16.msra.mxu1 %v560_v20 }
  0x52   :  { %527 = vmatprep.subr.bf16.mxu1 %v681_v0 }
  0x53   :  { %510 = vmatpush3.bf16.msra.mxu0 %v554_v14 }
  0x54   :  { %511 = vmatprep.subr.bf16.mxu0 %v681_v0 }
  0x55   :  { %528 = vmatpush3.bf16.msra.mxu1 %v561_v34 }
  0x56   :  { %529 = vmatprep.subr.bf16.mxu1 %v681_v0 }
  0x57   :  { %512 = vmatpush3.bf16.msra.mxu0 %v555_v15 }
  0x58   :  { %513 = vmatprep.subr.bf16.mxu0 %v681_v0 }
  0x59   :  { %530 = vmatpush3.bf16.msra.mxu1 %v562_v35 }
  0x5a   :  { %531 = vmatprep.subr.bf16.mxu1 %v681_v0 }
  0x5b   :  { %514 = vmatpush3.bf16.msra.mxu0 %v556_v16 }
  0x5c   :  { %515 = vmatprep.subr.bf16.mxu0 %v681_v0 }
  0x5d   :  { %532 = vmatpush3.bf16.msra.mxu1 %v563_v36 }
  0x5e   :  { %533 = vmatprep.subr.bf16.mxu1 %v681_v0 }
  0x5f   :  { %516 = vmatpush3.bf16.msra.mxu0 %v557_v17 }
  0x61   :  { %534 = vmatpush3.bf16.msra.mxu1 %v564_v37 }
  0x62   :  { %535 = vmatprep.subr.bf16.mxu1 %v681_v0 }
  0x65   :  { %536 = vmatpush3.bf16.msra.mxu1 %v565_v38 }
 0x102   :  { %v142_v21 = vpop.f32.mrf.mxu0 }
 0x104   :  { %v491_v22 = vpop.f32.mrf.mxu0 }
 0x106   :  { %v145_v23 = vpop.f32.mrf.mxu0 }
 0x107   :  { %v198_v24 = vpop.f32.mrf.mxu1 }
 0x108   :  { %v492_v26 = vpop.f32.mrf.mxu0  ;;  %v199_v27 = vadd.f32 %v198_v24, %v142_v21 }
 0x109   :  { %v499_v28 = vpop.f32.mrf.mxu1 }
 0x10a   :  { %v211_v29 = vadd.f32 %v446_v25, %v199_v27 }
 0x10b   :  { %v201_v30 = vpop.f32.mrf.mxu1 }
 0x10c   :  { %566 = vtanh.f32 %v211_v29 }
 0x10d   :  { %v500_v31 = vpop.f32.mrf.mxu1 }
 0x119   :  { %v567_v32 = vpop.eup %566 }
 0x11a   :  { %v213_v33 = vpack.c.bf16 %v567_v32, %v567_v32 }
 0x11c   :  { %518 = vmatmul.mubr.bf16.vlgmr.msra.gmra.mxu0 %v213_v33 }
 0x1dc   :  { %v319_v40 = vpop.f32.mrf.mxu0 }
 0x1dd   :  { %v320_v41 = vadd.f32 %v447_v39, %v319_v40 }
 0x1de   :  { %v519_v42 = vpop.f32.mrf.mxu0 }
 0x1df   :  { %568 = vtanh.f32 %v320_v41 }
 0x1e0   :  { %v322_v43 = vpop.f32.mrf.mxu0 }
 0x1e2   :  { %v520_v44 = vpop.f32.mrf.mxu0 }
 0x1ec   :  { %v569_v45 = vpop.eup %568 }
 0x1ed   :  { %v326_v46 = vpack.c.bf16 %v569_v45, %v569_v45 }
 0x1ef   :  { %538 = vmatmul.mubr.bf16.vlgmr.msra.gmra.mxu1 %v326_v46 }
 0x2af   :  { %v427_v48 = vpop.f32.mrf.mxu1 }
 0x2b0   :  { %v428_v49 = vadd.f32 %v427_v48, %v344_v47 }
 0x2b1   :  { %v539_v50 = vpop.f32.mrf.mxu1 }
 0x2b2   :  { %434 = vst.msk [vmem:[%s844_s9] sm:$0xff] %vm433_vm4, %v428_v49 }
 0x2b3   :  { %v430_v51 = vpop.f32.mrf.mxu1 }
 0x2b5   :  { %v540_v52 = vpop.f32.mrf.mxu1 }
 0x2b6   :  { %439 = vsyncpa [#allocation4], 1 }
 0x2b7   :  { %440 = vsyncpa [#allocation6], 1 }
 0x2b8   :  { %441 = vsyncpa [#allocation9], 1 }

</bundles_post_ra>
